<compile_context>
chip_gen: v6e
topology: v6e:2x2x1
jax: 0.10.0
libtpu: 0.0.40
codegen_flags: <defaults>
</compile_context>

<pallas_src>
import jax
import jax.numpy as jnp
from jax.experimental import pallas as pl
from jax.experimental.pallas import tpu as pltpu

HIDDEN = 200          # logical hidden width (PyTorch reference)
HID_PAD = 256         # padded hidden width (2 x 128 lanes)
A_PAD = 128           # padded action width (1 lane group)


def _round_up(x, m):
    return ((x + m - 1) // m) * m


def _cdiv(a, b):
    return -(-a // b)


def _choose_tiling(B, max_tile=512):
    """Pick (tile_b, b_pad, num_tiles).

    * rows rounded to 16 (bf16 packs 16 sublanes per vreg),
    * single tile when the whole batch fits in `max_tile`,
    * otherwise an EVEN number of tiles so v7x's two TensorCores split the
      'parallel' batch axis without a 2:1 imbalance (no effect on v5e/v6e).
    """
    b16 = _round_up(B, 16)
    if b16 <= max_tile:
        return b16, b16, 1
    n = _cdiv(b16, max_tile)
    if n % 2:
        n += 1
    tile_b = _round_up(_cdiv(b16, n), 16)
    return tile_b, tile_b * n, n


def make_actor_kernel(max_action: float, a_pad: int):
    def actor_kernel(state_ref, noise_ref,
                     w1_ref, b1_ref, w2_ref, b2_ref, wh_ref, bh_ref,
                     out_ref):
        x = state_ref[...]                                        # (TB, S) bf16

        # linear1: Linear(S,200p) + ReLU + Linear(200p,200p) + ReLU
        h = jnp.dot(x, w1_ref[...], preferred_element_type=jnp.float32)
        h = jnp.maximum(h + b1_ref[...], 0.0)                     # (TB, 256) f32
        h = jnp.dot(h.astype(jnp.bfloat16), w2_ref[...],
                    preferred_element_type=jnp.float32)
        h = jnp.maximum(h + b2_ref[...], 0.0)                     # (TB, 256) f32

        # fused mean / log_std head: single matmul -> (TB, 2*128)
        head = jnp.dot(h.astype(jnp.bfloat16), wh_ref[...],
                       preferred_element_type=jnp.float32) + bh_ref[...]
        mean = head[:, :a_pad]                                    # (TB, 128)
        log_std = head[:, a_pad:]                                 # (TB, 128)
        # NOTE: no log_std clamp — the PyTorch reference does not clamp.

        # reparameterized sample + tanh squash, all f32 elementwise.
        z = mean + jnp.exp(log_std) * noise_ref[...]
        out_ref[...] = (max_action * jnp.tanh(z)).astype(out_ref.dtype)

    return actor_kernel


def init_params(key, state_dim, action_dim, hidden=HIDDEN):
    """Deterministic synthetic init (PyTorch-style uniform fan-in bounds).
    Weights are (in, out) = transpose of nn.Linear's (out, in) layout."""
    ks = jax.random.split(key, 8)

    def uniform(k, shape, fan_in):
        bound = 1.0 / jnp.sqrt(jnp.float32(fan_in))
        return jax.random.uniform(k, shape, jnp.float32, -bound, bound)

    return {
        "w1": uniform(ks[0], (state_dim, hidden), state_dim),
        "b1": uniform(ks[1], (1, hidden), state_dim),
        "w2": uniform(ks[2], (hidden, hidden), hidden),
        "b2": uniform(ks[3], (1, hidden), hidden),
        "wm": uniform(ks[4], (hidden, action_dim), hidden),
        "bm": uniform(ks[5], (1, action_dim), hidden),
        "ws": uniform(ks[6], (hidden, action_dim), hidden),
        "bs": uniform(ks[7], (1, action_dim), hidden),
    }


def prepare_params(params, hid_pad=HID_PAD, a_pad=A_PAD):
    """One-time host-side prep: zero-pad hidden 200->256, fuse the two head
    weights into one lane-dense (256, 256) matrix, cast weights to bf16
    (biases stay f32)."""
    state_dim, hidden = params["w1"].shape
    action_dim = params["wm"].shape[1]
    f32 = jnp.float32

    w1 = jnp.zeros((state_dim, hid_pad), f32).at[:, :hidden].set(params["w1"])
    b1 = jnp.zeros((1, hid_pad), f32).at[:, :hidden].set(params["b1"])
    w2 = jnp.zeros((hid_pad, hid_pad), f32).at[:hidden, :hidden].set(params["w2"])
    b2 = jnp.zeros((1, hid_pad), f32).at[:, :hidden].set(params["b2"])

    wh = (jnp.zeros((hid_pad, 2 * a_pad), f32)
          .at[:hidden, :action_dim].set(params["wm"])
          .at[:hidden, a_pad:a_pad + action_dim].set(params["ws"]))
    bh = (jnp.zeros((1, 2 * a_pad), f32)
          .at[:, :action_dim].set(params["bm"])
          .at[:, a_pad:a_pad + action_dim].set(params["bs"]))

    return {
        "w1": w1.astype(jnp.bfloat16), "b1": b1,
        "w2": w2.astype(jnp.bfloat16), "b2": b2,
        "wh": wh.astype(jnp.bfloat16), "bh": bh,
        "action_dim": int(action_dim),
    }


def actor_forward(state, prepared, max_action, noise_key, max_tile_b=512):
    """state: (B, state_dim) f32.  Returns (B, action_dim) f32 actions."""
    B, S = state.shape
    A = prepared["action_dim"]
    w1, b1, w2, b2, wh, bh = (prepared[k] for k in
                              ("w1", "b1", "w2", "b2", "wh", "bh"))
    hid_pad = w2.shape[0]
    a_pad = wh.shape[1] // 2

    tile_b, b_pad, num_tiles = _choose_tiling(B, max_tile_b)

    # Pre-cast to bf16 in the wrapper (halves input DMA, no in-kernel cast).
    x = state.astype(jnp.bfloat16)
    if b_pad != B:
        x = jnp.pad(x, ((0, b_pad - B), (0, 0)))

    # torch.randn equivalent, generated once over the padded slab and
    # streamed per tile (in-kernel hardware PRNG has no interpret lowering).
    noise = jax.random.normal(noise_key, (b_pad, a_pad), jnp.float32)

    kernel = make_actor_kernel(float(max_action), a_pad)

    flops = 2 * b_pad * (S * hid_pad + hid_pad * hid_pad + hid_pad * 2 * a_pad)
    bytes_accessed = int(
        x.size * x.dtype.itemsize
        + noise.size * noise.dtype.itemsize
        + sum(int(prepared[k].size) * prepared[k].dtype.itemsize
              for k in ("w1", "b1", "w2", "b2", "wh", "bh"))
        + b_pad * a_pad * 2)                                   # bf16 output slab
    cost = pl.CostEstimate(flops=flops,
                           transcendentals=2 * b_pad * a_pad,  # exp + tanh, padded
                           bytes_accessed=bytes_accessed)

    # Weights/biases: constant index_map -> VMEM-resident; single-buffered
    # (no redundant second pipeline copy).
    resident = dict(pipeline_mode=pl.Buffered(1))

    out_pad = pl.pallas_call(
        kernel,
        out_shape=jax.ShapeDtypeStruct((b_pad, a_pad), jnp.bfloat16),
        grid=(num_tiles,),
        in_specs=[
            # streamed per batch tile
            pl.BlockSpec((tile_b, S), lambda i: (i, 0)),
            pl.BlockSpec((tile_b, a_pad), lambda i: (i, 0)),
            # VMEM-resident weights / biases
            pl.BlockSpec((S, hid_pad), lambda i: (0, 0), **resident),
            pl.BlockSpec((1, hid_pad), lambda i: (0, 0), **resident),
            pl.BlockSpec((hid_pad, hid_pad), lambda i: (0, 0), **resident),
            pl.BlockSpec((1, hid_pad), lambda i: (0, 0), **resident),
            pl.BlockSpec((hid_pad, 2 * a_pad), lambda i: (0, 0), **resident),
            pl.BlockSpec((1, 2 * a_pad), lambda i: (0, 0), **resident),
        ],
        out_specs=pl.BlockSpec((tile_b, a_pad), lambda i: (i, 0)),
        compiler_params=pltpu.CompilerParams(
            dimension_semantics=("parallel",)),
        cost_estimate=cost,
    )(x, noise, w1, b1, w2, b2, wh, bh)

    # Lane-dense bf16 kernel output -> logical (B, action_dim) f32.
    # For production, prefer consuming the padded bf16 slab directly (lets XLA
    # fuse the slice) instead of materializing this small copy.
    return out_pad[:B, :A].astype(jnp.float32)


# TODO(synk): sample_multiple / log_pis methods of the PyTorch module are not
# implemented here; only forward() is kernelized.

if __name__ == "__main__":
    B, state_dim, action_dim = 2, 16, 4
    max_action = 1.0

    root = jax.random.PRNGKey(0)
    k_param, k_state, k_noise = jax.random.split(root, 3)

    params = init_params(k_param, state_dim, action_dim)
    prepared = prepare_params(params)
    state = jax.random.normal(k_state, (B, state_dim), jnp.float32)

    out = actor_forward(state, prepared, max_action, k_noise)
    jax.block_until_ready(out)

    assert out.shape == (B, action_dim)
    assert bool(jnp.all(jnp.isfinite(out)))
    assert bool(jnp.all(jnp.abs(out) <= max_action + 1e-6))

    # Pure-JAX f32 reference using the exact same noise the kernel consumed.
    _, b_pad_chk, _ = _choose_tiling(B)
    noise_full = jax.random.normal(k_noise, (b_pad_chk, A_PAD), jnp.float32)
    noise_ba = noise_full[:B, :action_dim]
    h_ref = jnp.maximum(state @ params["w1"] + params["b1"], 0.0)
    h_ref = jnp.maximum(h_ref @ params["w2"] + params["b2"], 0.0)
    mean_ref = h_ref @ params["wm"] + params["bm"]
    std_ref = jnp.exp(h_ref @ params["ws"] + params["bs"])
    ref = max_action * jnp.tanh(mean_ref + std_ref * noise_ba)
    assert bool(jnp.all(jnp.abs(out - ref) <= 0.1)), "mismatch vs f32 reference"

    print("KERNEL_OK")
</pallas_src>

<mosaic_0001>
module attributes {stable_mosaic.version = 11 : i64} {
  func.func @actor_kernel(%arg0: i32, %arg1: memref<16x16xbf16, #tpu.memory_space<vmem>>, %arg2: memref<16x128xf32, #tpu.memory_space<vmem>>, %arg3: memref<16x256xbf16, #tpu.memory_space<vmem>>, %arg4: memref<1x256xf32, #tpu.memory_space<vmem>>, %arg5: memref<256x256xbf16, #tpu.memory_space<vmem>>, %arg6: memref<1x256xf32, #tpu.memory_space<vmem>>, %arg7: memref<256x256xbf16, #tpu.memory_space<vmem>>, %arg8: memref<1x256xf32, #tpu.memory_space<vmem>>, %arg9: memref<16x128xbf16, #tpu.memory_space<vmem>>) attributes {dimension_semantics = [#tpu.dimension_semantics<parallel>], iteration_bounds = array<i64: 1>, scalar_prefetch = 0 : i64, scratch_operands = 0 : i64, tpu.core_type = #tpu.core_type<tc>, window_params = [{transform_indices = @transform_0, window_bounds = array<i64: 16, 16>}, {transform_indices = @transform_1, window_bounds = array<i64: 16, 128>}, {pipeline_mode = #tpu.pipeline_mode<synchronous>, transform_indices = @transform_2, window_bounds = array<i64: 16, 256>}, {pipeline_mode = #tpu.pipeline_mode<synchronous>, transform_indices = @transform_3, window_bounds = array<i64: 1, 256>}, {pipeline_mode = #tpu.pipeline_mode<synchronous>, transform_indices = @transform_4, window_bounds = array<i64: 256, 256>}, {pipeline_mode = #tpu.pipeline_mode<synchronous>, transform_indices = @transform_5, window_bounds = array<i64: 1, 256>}, {pipeline_mode = #tpu.pipeline_mode<synchronous>, transform_indices = @transform_6, window_bounds = array<i64: 256, 256>}, {pipeline_mode = #tpu.pipeline_mode<synchronous>, transform_indices = @transform_7, window_bounds = array<i64: 1, 256>}, {transform_indices = @transform_8, window_bounds = array<i64: 16, 128>}]} {
    %c0 = arith.constant 0 : index
    %c0_0 = arith.constant 0 : index
    %0 = vector.load %arg1[%c0, %c0_0] : memref<16x16xbf16, #tpu.memory_space<vmem>>, vector<16x16xbf16>
    %c0_1 = arith.constant 0 : index
    %c0_2 = arith.constant 0 : index
    %1 = vector.load %arg3[%c0_1, %c0_2] : memref<16x256xbf16, #tpu.memory_space<vmem>>, vector<16x256xbf16>
    %cst = arith.constant dense<0.000000e+00> : vector<16x256xf32>
    %2 = tpu.matmul %0, %1, %cst {dimension_numbers = #tpu.dot_dimension_numbers<[1], [0], [0], [1], [0, 0, 1, 1], [], []>} : vector<16x16xbf16>, vector<16x256xbf16>, vector<16x256xf32> -> vector<16x256xf32>
    %c0_3 = arith.constant 0 : index
    %c0_4 = arith.constant 0 : index
    %3 = vector.load %arg4[%c0_3, %c0_4] : memref<1x256xf32, #tpu.memory_space<vmem>>, vector<1x256xf32>
    %4 = vector.broadcast %3 : vector<1x256xf32> to vector<16x256xf32>
    %5 = arith.addf %2, %4 : vector<16x256xf32>
    %cst_5 = arith.constant 0.000000e+00 : f32
    %6 = vector.broadcast %cst_5 : f32 to vector<16x256xf32>
    %7 = arith.maximumf %5, %6 : vector<16x256xf32>
    %8 = arith.truncf %7 : vector<16x256xf32> to vector<16x256xbf16>
    %c0_6 = arith.constant 0 : index
    %c0_7 = arith.constant 0 : index
    %9 = vector.load %arg5[%c0_6, %c0_7] : memref<256x256xbf16, #tpu.memory_space<vmem>>, vector<256x256xbf16>
    %cst_8 = arith.constant dense<0.000000e+00> : vector<16x256xf32>
    %10 = tpu.matmul %8, %9, %cst_8 {dimension_numbers = #tpu.dot_dimension_numbers<[1], [0], [0], [1], [0, 0, 1, 1], [], []>} : vector<16x256xbf16>, vector<256x256xbf16>, vector<16x256xf32> -> vector<16x256xf32>
    %c0_9 = arith.constant 0 : index
    %c0_10 = arith.constant 0 : index
    %11 = vector.load %arg6[%c0_9, %c0_10] : memref<1x256xf32, #tpu.memory_space<vmem>>, vector<1x256xf32>
    %12 = vector.broadcast %11 : vector<1x256xf32> to vector<16x256xf32>
    %13 = arith.addf %10, %12 : vector<16x256xf32>
    %cst_11 = arith.constant 0.000000e+00 : f32
    %14 = vector.broadcast %cst_11 : f32 to vector<16x256xf32>
    %15 = arith.maximumf %13, %14 : vector<16x256xf32>
    %16 = arith.truncf %15 : vector<16x256xf32> to vector<16x256xbf16>
    %c0_12 = arith.constant 0 : index
    %c0_13 = arith.constant 0 : index
    %17 = vector.load %arg7[%c0_12, %c0_13] : memref<256x256xbf16, #tpu.memory_space<vmem>>, vector<256x256xbf16>
    %cst_14 = arith.constant dense<0.000000e+00> : vector<16x256xf32>
    %18 = tpu.matmul %16, %17, %cst_14 {dimension_numbers = #tpu.dot_dimension_numbers<[1], [0], [0], [1], [0, 0, 1, 1], [], []>} : vector<16x256xbf16>, vector<256x256xbf16>, vector<16x256xf32> -> vector<16x256xf32>
    %c0_15 = arith.constant 0 : index
    %c0_16 = arith.constant 0 : index
    %19 = vector.load %arg8[%c0_15, %c0_16] : memref<1x256xf32, #tpu.memory_space<vmem>>, vector<1x256xf32>
    %20 = vector.broadcast %19 : vector<1x256xf32> to vector<16x256xf32>
    %21 = arith.addf %18, %20 : vector<16x256xf32>
    %22 = vector.extract_strided_slice %21 {offsets = [0, 0], sizes = [16, 128], strides = [1, 1]} : vector<16x256xf32> to vector<16x128xf32>
    %23 = vector.extract_strided_slice %21 {offsets = [0, 128], sizes = [16, 128], strides = [1, 1]} : vector<16x256xf32> to vector<16x128xf32>
    %24 = math.exp %23 : vector<16x128xf32>
    %c0_17 = arith.constant 0 : index
    %c0_18 = arith.constant 0 : index
    %25 = vector.load %arg2[%c0_17, %c0_18] : memref<16x128xf32, #tpu.memory_space<vmem>>, vector<16x128xf32>
    %26 = arith.mulf %24, %25 : vector<16x128xf32>
    %27 = arith.addf %22, %26 : vector<16x128xf32>
    %28 = math.tanh %27 : vector<16x128xf32>
    %cst_19 = arith.constant 1.000000e+00 : f32
    %29 = vector.broadcast %cst_19 : f32 to vector<16x128xf32>
    %30 = arith.mulf %29, %28 : vector<16x128xf32>
    %31 = arith.truncf %30 : vector<16x128xf32> to vector<16x128xbf16>
    %c0_20 = arith.constant 0 : index
    %c0_21 = arith.constant 0 : index
    %32 = vector.load %arg9[%c0_20, %c0_21] : memref<16x128xbf16, #tpu.memory_space<vmem>>, vector<16x128xbf16>
    tpu.vector_store %arg9[%c0_20, %c0_21], %31 {strides = array<i32>} : memref<16x128xbf16, #tpu.memory_space<vmem>>, vector<16x128xbf16>,
    return
  }
  func.func @transform_0(%arg0: i32) -> (i32, i32) {
    %c0_i32 = arith.constant 0 : i32
    %c0_i32_0 = arith.constant 0 : i32
    return %arg0, %c0_i32 : i32, i32
  }
  func.func @transform_1(%arg0: i32) -> (i32, i32) {
    %c0_i32 = arith.constant 0 : i32
    %c0_i32_0 = arith.constant 0 : i32
    return %arg0, %c0_i32 : i32, i32
  }
  func.func @transform_2(%arg0: i32) -> (i32, i32) {
    %c0_i32 = arith.constant 0 : i32
    %c0_i32_0 = arith.constant 0 : i32
    %c0_i32_1 = arith.constant 0 : i32
    return %c0_i32, %c0_i32_0 : i32, i32
  }
  func.func @transform_3(%arg0: i32) -> (i32, i32) {
    %c0_i32 = arith.constant 0 : i32
    %c0_i32_0 = arith.constant 0 : i32
    %c0_i32_1 = arith.constant 0 : i32
    return %c0_i32, %c0_i32_0 : i32, i32
  }
  func.func @transform_4(%arg0: i32) -> (i32, i32) {
    %c0_i32 = arith.constant 0 : i32
    %c0_i32_0 = arith.constant 0 : i32
    %c0_i32_1 = arith.constant 0 : i32
    return %c0_i32, %c0_i32_0 : i32, i32
  }
  func.func @transform_5(%arg0: i32) -> (i32, i32) {
    %c0_i32 = arith.constant 0 : i32
    %c0_i32_0 = arith.constant 0 : i32
    %c0_i32_1 = arith.constant 0 : i32
    return %c0_i32, %c0_i32_0 : i32, i32
  }
  func.func @transform_6(%arg0: i32) -> (i32, i32) {
    %c0_i32 = arith.constant 0 : i32
    %c0_i32_0 = arith.constant 0 : i32
    %c0_i32_1 = arith.constant 0 : i32
    return %c0_i32, %c0_i32_0 : i32, i32
  }
  func.func @transform_7(%arg0: i32) -> (i32, i32) {
    %c0_i32 = arith.constant 0 : i32
    %c0_i32_0 = arith.constant 0 : i32
    %c0_i32_1 = arith.constant 0 : i32
    return %c0_i32, %c0_i32_0 : i32, i32
  }
  func.func @transform_8(%arg0: i32) -> (i32, i32) {
    %c0_i32 = arith.constant 0 : i32
    %c0_i32_0 = arith.constant 0 : i32
    return %arg0, %c0_i32 : i32, i32
  }
}

</mosaic_0001>

<bundles_post_ra>
// kernel: tpu_custom_call.1
= control target key start
LH: loop header
LB: loop body
LE: loop exit
PB: predicated region body
PF: predicated region fallthrough
CT: control target
= control target key end

     0   :  { %13 = vsyncpa [#allocation3], 0  ;;  %s1154_s0 = inlined_call_operand.hbm [shape: bf16[16,16], index: 0, kind: input, shape index: {}]   ;;  %s1155_s1 = inlined_call_operand.hbm [shape: f32[16,128], index: 1, kind: input, shape index: {}]   ;;  %s1156_s2 = inlined_call_operand.hbm [shape: bf16[16,256], index: 2, kind: input, shape index: {}]   ;;  %s1157_s3 = inlined_call_operand.vmem [shape: f32[1,256], index: 3, kind: input, shape index: {}]   ;;  %s1158_s4 = inlined_call_operand.hbm [shape: bf16[256,256], index: 4, kind: input, shape index: {}]   ;;  %s1159_s5 = inlined_call_operand.vmem [shape: f32[1,256], index: 5, kind: input, shape index: {}]   ;;  %s1160_s6 = inlined_call_operand.hbm [shape: bf16[256,256], index: 6, kind: input, shape index: {}]   ;;  %s1161_s7 = inlined_call_operand.vmem [shape: f32[1,256], index: 7, kind: input, shape index: {}]   ;;  %s1162_s8 = inlined_call_operand.hbm [shape: bf16[16,128], index: 8, kind: output, shape index: {}]  }
   0x1   :  { %14 = vsyncpa [#allocation6], 0 }
   0x2   :  { %15 = vsyncpa [#allocation9], 0 }
   0x3   :  { %16 = vsyncpa [#allocation4], 0  ;;  %s1048_s27 = smov [#allocation5]  }
   0x4   :  { %s34_s28 = sshll.u32 %s1048_s27, 4  ;;  %s35_s28 = int_to_ptr.vmem [resolvable:$true] %s34_s28 }
   0x5   :  { %s928_s29 = scalar_lea.vmem %s35_s28, 256  ;;  %p933_p1 = scmp.lt.s32.totalorder %s35_s28, %s35_s28 }
   0x6   :  { %p929_p0 = scmp.ne.s32.totalorder %s35_s28, %s928_s29  ;;  %p934_p2 = scmp.lt.s32.totalorder %s928_s29, %s928_s29 }
   0x8   :  { %p935_p3 = por %p934_p2, %p933_p1 }
   0xa   :  { %p936_p4 = pnand %p935_p3, %p929_p0 }
   0xc   :  { %939 = shalt.err (!%p936_p4)
}
   0xd   :  { %s1049_s30 = smov 128   ;;  %s1050_s9 = smov 8  }
   0xe   :  { %40 = dma.hbm_to_vmem [thread:$0]  %s1155_s1, 256, %s35_s28, [#allocation6], %s1049_s30, %s1049_s30, %s1050_s9  }
   0xf   :  { %s1051_s12 = smov [#allocation8]   ;;  %s1052_s14 = smov [#allocation2]  }
  0x10   :  { %s60_s13 = sshll.u32 %s1051_s12, 4  ;;  %s22_s15 = sshll.u32 %s1052_s14, 4  ;;  %s61_s13 = int_to_ptr.vmem [resolvable:$true] %s60_s13  ;;  %s23_s15 = int_to_ptr.vmem [resolvable:$true] %s22_s15 }
  0x11   :  { %s948_s16 = scalar_lea.vmem %s61_s13, 4096  ;;  %p953_p6 = scmp.lt.s32.totalorder %s61_s13, %s61_s13 }
  0x12   :  { %p949_p5 = scmp.ne.s32.totalorder %s61_s13, %s948_s16  ;;  %p954_p7 = scmp.lt.s32.totalorder %s948_s16, %s948_s16 }
  0x14   :  { %p955_p8 = por %p954_p7, %p953_p6 }
  0x16   :  { %p956_p9 = pnand %p955_p8, %p949_p5 }
  0x18   :  { %959 = shalt.err (!%p956_p9)
}
  0x19   :  { %66 = dma.hbm_to_vmem [thread:$0]  %s1158_s4, 4096, %s61_s13, [#allocation9], %s1049_s30, %s1049_s30, %s1050_s9  }
  0x1a   :  { %s968_s1 = scalar_lea.vmem %s23_s15, 128  ;;  %p973_p11 = scmp.lt.s32.totalorder %s23_s15, %s23_s15 }
  0x1b   :  { %p969_p10 = scmp.ne.s32.totalorder %s23_s15, %s968_s1  ;;  %p974_p12 = scmp.lt.s32.totalorder %s968_s1, %s968_s1 }
  0x1d   :  { %p975_p13 = por %p974_p12, %p973_p11 }
  0x1f   :  { %p976_p0 = pnand %p975_p13, %p969_p10 }
  0x21   :  { %979 = shalt.err (!%p976_p0)
}
  0x22   :  { %s1053_s19 = smov 64   ;;  %s1054_s20 = smov 4  }
  0x23   :  { %28 = dma.hbm_to_vmem [thread:$0]  %s1154_s0, 128, %s23_s15, [#allocation3], %s1053_s19, %s1053_s19, %s1054_s20  }
  0x24   :  { %s1055_s23 = smov [#allocation7]   ;;  %s1056_s4 = smov [#allocation10]  }
  0x25   :  { %s46_s24 = sshll.u32 %s1055_s23, 4  ;;  %s74_s25 = sshll.u32 %s1056_s4, 4  ;;  %s47_s24 = int_to_ptr.vmem [resolvable:$true] %s46_s24  ;;  %s75_s25 = int_to_ptr.vmem [resolvable:$true] %s74_s25 }
  0x26   :  { %s988_s26 = scalar_lea.vmem %s47_s24, 256  ;;  %p993_p2 = scmp.lt.s32.totalorder %s47_s24, %s47_s24 }
  0x27   :  { %p989_p1 = scmp.ne.s32.totalorder %s47_s24, %s988_s26  ;;  %p994_p3 = scmp.lt.s32.totalorder %s988_s26, %s988_s26 }
  0x29   :  { %p995_p4 = por %p994_p3, %p993_p2 }
  0x2b   :  { %p996_p5 = pnand %p995_p4, %p989_p1 }
  0x2d   :  { %999 = shalt.err (!%p996_p5)
}
  0x2e   :  { %52 = dma.hbm_to_vmem [thread:$0]  %s1156_s2, 256, %s47_s24, [#allocation6], %s1049_s30, %s1049_s30, %s1050_s9  }
  0x2f   :  { %s1008_s0 = scalar_lea.vmem %s75_s25, 4096  ;;  %p1013_p7 = scmp.lt.s32.totalorder %s75_s25, %s75_s25 }
  0x30   :  { %p1009_p6 = scmp.ne.s32.totalorder %s75_s25, %s1008_s0  ;;  %p1014_p8 = scmp.lt.s32.totalorder %s1008_s0, %s1008_s0 }
  0x32   :  { %p1015_p9 = por %p1014_p8, %p1013_p7 }
  0x34   :  { %p1016_p10 = pnand %p1015_p9, %p1009_p6 }
  0x36   :  { %1019 = shalt.err (!%p1016_p10)
}
  0x37   :  { %80 = dma.hbm_to_vmem [thread:$0]  %s1160_s6, 4096, %s75_s25, [#allocation9], %s1049_s30, %s1049_s30, %s1050_s9  }
  0x38   :  { %1040 = dma.done.wait [#allocation3], 128  }
  0x39   :  { %1041 = vsyncadd [#allocation3], 4294967168 }
  0x3a   :  { %1042 = dma.done.wait [#allocation6], 512  }
  0x3b   :  { %1043 = vsyncadd [#allocation6], 4294966784 }
  0x3c   :  { %1044 = dma.done.wait [#allocation9], 8192  }
  0x3d   :  { %1045 = vsyncadd [#allocation9], 4294959104  ;;  %v1057_v0 = vmov 0   ;;  %v812_v1 = vld [vmem:[#allocation7 + $0x4] ss:$8 sps:$4 sm:$0xff]   ;;  %vm130_vm0 = vcmask 130048   ;;  %v105_v62 = vlaneseq }
  0x3e   :  { %166 = vmatprep.mubr.bf16.mxu0 %v1057_v0  ;;  %v814_v2 = vld [vmem:[#allocation7] ss:$8 sps:$4 sm:$0xff]   ;;  %148 = vmatprep.subr.bf16.mxu0 %v812_v1  ;;  %v816_v4 = vld [vmem:[#allocation8 + $0x74] ss:$8 sps:$4 sm:$0xff]   ;;  %v819_v6 = vld [vmem:[#allocation8 + $0x64] ss:$8 sps:$4 sm:$0xff]  }
  0x3f   :  { %v815_v3 = vld [vmem:[#allocation2] sm:$0xff]   ;;  %149 = vmatpush1.bf16.msra.mxu0 %v814_v2  ;;  %387 = vmatprep.subr.bf16.mxu1 %v816_v4  ;;  %v821_v7 = vld [vmem:[#allocation8 + $0x60] ss:$8 sps:$4 sm:$0xff]   ;;  %v825_v10 = vld [vmem:[#allocation8 + $0x44] ss:$8 sps:$4 sm:$0xff]   ;;  %v106_v63 = vshrl.u32 %v105_v62, 7 }
  0x40   :  { %v818_v5 = vld [vmem:[#allocation8 + $0x70] ss:$8 sps:$4 sm:$0xff]   ;;  %v822_v8 = vld [vmem:[#allocation8 + $0x54] ss:$8 sps:$4 sm:$0xff]   ;;  %v827_v11 = vld [vmem:[#allocation8 + $0x40] ss:$8 sps:$4 sm:$0xff]  }
  0x41   :  { %388 = vmatpush1.bf16.msra.mxu1 %v818_v5  ;;  %v824_v9 = vld [vmem:[#allocation8 + $0x50] ss:$8 sps:$4 sm:$0xff]   ;;  %v828_v12 = vld [vmem:[#allocation8 + $0x34] ss:$8 sps:$4 sm:$0xff]   ;;  %v831_v14 = vld [vmem:[#allocation8 + $0x24] ss:$8 sps:$4 sm:$0xff]  }
  0x42   :  { %727 = vmatmul.mubr.msk.bf16.vlgmr.msra.gmra.mxu0 %vm130_vm0, %v815_v3  ;;  %389 = vmatprep.subr.bf16.mxu1 %v819_v6  ;;  %v830_v13 = vld [vmem:[#allocation8 + $0x30] ss:$8 sps:$4 sm:$0xff]   ;;  %v833_v15 = vld [vmem:[#allocation8 + $0x20] ss:$8 sps:$4 sm:$0xff]   ;;  %v834_v16 = vld [vmem:[#allocation8 + $0x14] ss:$8 sps:$4 sm:$0xff]  }
  0x43   :  { %v836_v17 = vld [vmem:[#allocation8 + $0x10] ss:$8 sps:$4 sm:$0xff]   ;;  %v837_v18 = vld [vmem:[#allocation8 + $0x4] ss:$8 sps:$4 sm:$0xff]   ;;  %v839_v19 = vld [vmem:[#allocation8] ss:$8 sps:$4 sm:$0xff]  }
  0x44   :  { %v840_v20 = vld [vmem:[#allocation8 + $0xf4] ss:$8 sps:$4 sm:$0xff]   ;;  %v842_v21 = vld [vmem:[#allocation8 + $0xf0] ss:$8 sps:$4 sm:$0xff]   ;;  %v843_v22 = vld [vmem:[#allocation8 + $0xe4] ss:$8 sps:$4 sm:$0xff]  }
  0x45   :  { %390 = vmatpush1.bf16.msra.mxu1 %v821_v7  ;;  %v845_v23 = vld [vmem:[#allocation8 + $0xe0] ss:$8 sps:$4 sm:$0xff]   ;;  %v846_v24 = vld [vmem:[#allocation8 + $0xd4] ss:$8 sps:$4 sm:$0xff]   ;;  %v848_v25 = vld [vmem:[#allocation8 + $0xd0] ss:$8 sps:$4 sm:$0xff]  }
  0x46   :  { %391 = vmatprep.subr.bf16.mxu1 %v822_v8  ;;  %v849_v26 = vld [vmem:[#allocation8 + $0xc4] ss:$8 sps:$4 sm:$0xff]   ;;  %v851_v27 = vld [vmem:[#allocation8 + $0xc0] ss:$8 sps:$4 sm:$0xff]   ;;  %v852_v28 = vld [vmem:[#allocation8 + $0xb4] ss:$8 sps:$4 sm:$0xff]  }
  0x47   :  { %v854_v29 = vld [vmem:[#allocation8 + $0xb0] ss:$8 sps:$4 sm:$0xff]   ;;  %v855_v30 = vld [vmem:[#allocation8 + $0xa4] ss:$8 sps:$4 sm:$0xff]   ;;  %v857_v31 = vld [vmem:[#allocation8 + $0xa0] ss:$8 sps:$4 sm:$0xff]  }
  0x48   :  { %v858_v32 = vld [vmem:[#allocation8 + $0x94] ss:$8 sps:$4 sm:$0xff]   ;;  %v860_v33 = vld [vmem:[#allocation8 + $0x90] ss:$8 sps:$4 sm:$0xff]   ;;  %v861_v34 = vld [vmem:[#allocation8 + $0x84] ss:$8 sps:$4 sm:$0xff]  }
  0x49   :  { %392 = vmatpush1.bf16.msra.mxu1 %v824_v9  ;;  %v863_v35 = vld [vmem:[#allocation8 + $0x80] ss:$8 sps:$4 sm:$0xff]   ;;  %v864_v36 = vld [vmem:[#allocation10 + $0x70] ss:$8 sps:$4 sm:$0xff]   ;;  %v866_v37 = vld [vmem:[#allocation10 + $0x74] ss:$8 sps:$4 sm:$0xff]  }
  0x4a   :  { %393 = vmatprep.subr.bf16.mxu1 %v825_v10  ;;  %v869_v38 = vld [vmem:[#allocation10 + $0x64] ss:$8 sps:$4 sm:$0xff]   ;;  %640 = vmatprep.subr.bf16.mxu0 %v866_v37  ;;  %v867_v39 = vld [vmem:[#allocation10 + $0x60] ss:$8 sps:$4 sm:$0xff]   ;;  %v872_v40 = vld [vmem:[#allocation10 + $0x54] ss:$8 sps:$4 sm:$0xff]  }
  0x4b   :  { %641 = vmatpush1.bf16.msra.mxu0 %v864_v36  ;;  %v870_v41 = vld [vmem:[#allocation10 + $0x50] ss:$8 sps:$4 sm:$0xff]   ;;  %v875_v42 = vld [vmem:[#allocation10 + $0x44] ss:$8 sps:$4 sm:$0xff]   ;;  %v873_v43 = vld [vmem:[#allocation10 + $0x40] ss:$8 sps:$4 sm:$0xff]  }
  0x4c   :  { %642 = vmatprep.subr.bf16.mxu0 %v869_v38  ;;  %v878_v44 = vld [vmem:[#allocation10 + $0x34] ss:$8 sps:$4 sm:$0xff]   ;;  %v876_v45 = vld [vmem:[#allocation10 + $0x30] ss:$8 sps:$4 sm:$0xff]   ;;  %v881_v46 = vld [vmem:[#allocation10 + $0x24] ss:$8 sps:$4 sm:$0xff]  }
  0x4d   :  { %394 = vmatpush1.bf16.msra.mxu1 %v827_v11  ;;  %v879_v47 = vld [vmem:[#allocation10 + $0x20] ss:$8 sps:$4 sm:$0xff]   ;;  %v884_v48 = vld [vmem:[#allocation10 + $0x14] ss:$8 sps:$4 sm:$0xff]   ;;  %v882_v49 = vld [vmem:[#allocation10 + $0x10] ss:$8 sps:$4 sm:$0xff]  }
  0x4e   :  { %395 = vmatprep.subr.bf16.mxu1 %v828_v12  ;;  %v887_v50 = vld [vmem:[#allocation10 + $0x4] ss:$8 sps:$4 sm:$0xff]   ;;  %v885_v51 = vld [vmem:[#allocation10] ss:$8 sps:$4 sm:$0xff]   ;;  %v890_v52 = vld [vmem:[#allocation10 + $0xf4] ss:$8 sps:$4 sm:$0xff]  }
  0x4f   :  { %643 = vmatpush1.bf16.msra.mxu0 %v867_v39  ;;  %v888_v53 = vld [vmem:[#allocation10 + $0xf0] ss:$8 sps:$4 sm:$0xff]   ;;  %v893_v54 = vld [vmem:[#allocation10 + $0xe4] ss:$8 sps:$4 sm:$0xff]   ;;  %v891_v55 = vld [vmem:[#allocation10 + $0xe0] ss:$8 sps:$4 sm:$0xff]  }
  0x50   :  { %644 = vmatprep.subr.bf16.mxu0 %v872_v40  ;;  %v896_v56 = vld [vmem:[#allocation10 + $0xd4] ss:$8 sps:$4 sm:$0xff]   ;;  %v894_v57 = vld [vmem:[#allocation10 + $0xd0] ss:$8 sps:$4 sm:$0xff]   ;;  %v899_v58 = vld [vmem:[#allocation10 + $0xc4] ss:$8 sps:$4 sm:$0xff]  }
  0x51   :  { %396 = vmatpush1.bf16.msra.mxu1 %v830_v13  ;;  %v897_v59 = vld [vmem:[#allocation10 + $0xc0] ss:$8 sps:$4 sm:$0xff]   ;;  %v902_v60 = vld [vmem:[#allocation10 + $0xb4] ss:$8 sps:$4 sm:$0xff]   ;;  %v900_v61 = vld [vmem:[#allocation10 + $0xb0] ss:$8 sps:$4 sm:$0xff]  }
  0x52   :  { %397 = vmatprep.subr.bf16.mxu1 %v831_v14  ;;  %v111_v0 = vsub.s32 1, %v106_v63  ;;  %v1134_v1 = vsub.s32 0, %v106_v63  ;;  %v103_v2 = vld [vmem:[%s1157_s3] sm:$0x3] }
  0x53   :  { %645 = vmatpush1.bf16.msra.mxu0 %v870_v41 }
  0x54   :  { %646 = vmatprep.subr.bf16.mxu0 %v875_v42  ;;  %v112_v4 = vrot.slane %v103_v2, %v111_v0  ;;  %v108_v5 = vrot.slane %v103_v2, %v1134_v1  ;;  %v468_v42 = vld [vmem:[%s1161_s7] sm:$0x3]  ;;  %s1058_s7 = smov [#allocation11]  }
  0x55   :  { %398 = vmatpush1.bf16.msra.mxu1 %v833_v15  ;;  %s710_s11 = sshll.u32 %s1058_s7, 4  ;;  %s711_s11 = int_to_ptr.vmem [resolvable:$true] %s710_s11 }
  0x56   :  { %399 = vmatprep.subr.bf16.mxu1 %v834_v16  ;;  %s1020_s12 = scalar_lea.vmem %s711_s11, 128  ;;  %p1025_p12 = scmp.lt.s32.totalorder %s711_s11, %s711_s11 }
  0x57   :  { %647 = vmatpush1.bf16.msra.mxu0 %v873_v43  ;;  %v477_v43 = vrot.slane %v468_v42, %v111_v0  ;;  %p1021_p11 = scmp.ne.s32.totalorder %s711_s11, %s1020_s12  ;;  %p1026_p13 = scmp.lt.s32.totalorder %s1020_s12, %s1020_s12 }
  0x58   :  { %648 = vmatprep.subr.bf16.mxu0 %v878_v44 }
  0x59   :  { %400 = vmatpush1.bf16.msra.mxu1 %v836_v17  ;;  %p1027_p0 = por %p1026_p13, %p1025_p12 }
  0x5a   :  { %401 = vmatprep.subr.bf16.mxu1 %v837_v18 }
  0x5b   :  { %649 = vmatpush1.bf16.msra.mxu0 %v876_v45  ;;  %p1028_p1 = pnand %p1027_p0, %p1021_p11 }
  0x5c   :  { %650 = vmatprep.subr.bf16.mxu0 %v881_v46 }
  0x5d   :  { %402 = vmatpush1.bf16.msra.mxu1 %v839_v19  ;;  %v905_v19 = vld [vmem:[#allocation10 + $0xa4] ss:$8 sps:$4 sm:$0xff]  }
  0x5e   :  { %403 = vmatprep.subr.bf16.mxu1 %v840_v20  ;;  %v903_v20 = vld [vmem:[#allocation10 + $0xa0] ss:$8 sps:$4 sm:$0xff]  }
  0x5f   :  { %651 = vmatpush1.bf16.msra.mxu0 %v879_v47 }
  0x60   :  { %652 = vmatprep.subr.bf16.mxu0 %v884_v48 }
  0x61   :  { %404 = vmatpush2.bf16.msra.mxu1 %v842_v21  ;;  %v908_v21 = vld [vmem:[#allocation10 + $0x94] ss:$8 sps:$4 sm:$0xff]  }
  0x62   :  { %405 = vmatprep.subr.bf16.mxu1 %v843_v22  ;;  %v906_v22 = vld [vmem:[#allocation10 + $0x90] ss:$8 sps:$4 sm:$0xff]  }
  0x63   :  { %653 = vmatpush1.bf16.msra.mxu0 %v882_v49 }
  0x64   :  { %654 = vmatprep.subr.bf16.mxu0 %v887_v50 }
  0x65   :  { %406 = vmatpush2.bf16.msra.mxu1 %v845_v23  ;;  %v911_v23 = vld [vmem:[#allocation10 + $0x84] ss:$8 sps:$4 sm:$0xff]  }
  0x66   :  { %407 = vmatprep.subr.bf16.mxu1 %v846_v24  ;;  %v909_v24 = vld [vmem:[#allocation10 + $0x80] ss:$8 sps:$4 sm:$0xff]  }
  0x67   :  { %655 = vmatpush1.bf16.msra.mxu0 %v885_v51 }
  0x68   :  { %656 = vmatprep.subr.bf16.mxu0 %v890_v52  ;;  %v473_v52 = vrot.slane %v468_v42, %v1134_v1 }
  0x69   :  { %408 = vmatpush2.bf16.msra.mxu1 %v848_v25  ;;  %v215_v25 = vld [vmem:[%s1159_s5] sm:$0x3] }
  0x6a   :  { %409 = vmatprep.subr.bf16.mxu1 %v849_v26 }
  0x6b   :  { %657 = vmatpush2.bf16.msra.mxu0 %v888_v53  ;;  %v687_v53 = vld [vmem:[#allocation5] sm:$0xff] }
  0x6c   :  { %658 = vmatprep.subr.bf16.mxu0 %v893_v54 }
  0x6d   :  { %410 = vmatpush2.bf16.msra.mxu1 %v851_v27  ;;  %v224_v27 = vrot.slane %v215_v25, %v111_v0 }
  0x6e   :  { %411 = vmatprep.subr.bf16.mxu1 %v852_v28  ;;  %v220_v28 = vrot.slane %v215_v25, %v1134_v1 }
  0x6f   :  { %659 = vmatpush2.bf16.msra.mxu0 %v891_v55 }
  0x70   :  { %660 = vmatprep.subr.bf16.mxu0 %v896_v56 }
  0x71   :  { %412 = vmatpush2.bf16.msra.mxu1 %v854_v29 }
  0x72   :  { %413 = vmatprep.subr.bf16.mxu1 %v855_v30 }
  0x73   :  { %661 = vmatpush2.bf16.msra.mxu0 %v894_v57  ;;  %v688_v57 = vld [vmem:[#allocation5 + $0x8] sm:$0xff] }
  0x74   :  { %662 = vmatprep.subr.bf16.mxu0 %v899_v58 }
  0x75   :  { %414 = vmatpush2.bf16.msra.mxu1 %v857_v31 }
  0x76   :  { %415 = vmatprep.subr.bf16.mxu1 %v858_v32 }
  0x77   :  { %663 = vmatpush2.bf16.msra.mxu0 %v897_v59 }
  0x78   :  { %664 = vmatprep.subr.bf16.mxu0 %v902_v60 }
  0x79   :  { %416 = vmatpush2.bf16.msra.mxu1 %v860_v33 }
  0x7a   :  { %417 = vmatprep.subr.bf16.mxu1 %v861_v34 }
  0x7b   :  { %665 = vmatpush2.bf16.msra.mxu0 %v900_v61 }
  0x7c   :  { %666 = vmatprep.subr.bf16.mxu0 %v905_v19 }
  0x7d   :  { %418 = vmatpush2.bf16.msra.mxu1 %v863_v35 }
  0x7f   :  { %667 = vmatpush2.bf16.msra.mxu0 %v903_v20 }
  0x80   :  { %668 = vmatprep.subr.bf16.mxu0 %v908_v21 }
  0x83   :  { %669 = vmatpush2.bf16.msra.mxu0 %v906_v22 }
  0x84   :  { %670 = vmatprep.subr.bf16.mxu0 %v911_v23 }
  0x87   :  { %671 = vmatpush2.bf16.msra.mxu0 %v909_v24 }
 0x102   :  { %v168_v3 = vpop.f32.mrf.mxu0 }
 0x103   :  { %v169_v10 = vadd.f32 %v168_v3, %v108_v5 }
 0x104   :  { %v170_v6 = vpop.f32.mrf.mxu0 }
 0x105   :  { %v171_v8 = vadd.f32 %v170_v6, %v112_v4  ;;  %v177_v16 = vmax.f32 %v169_v10, 0.0 }
 0x106   :  { %v172_v7 = vpop.f32.mrf.mxu0 }
 0x107   :  { %v173_v9 = vadd.f32 %v172_v7, %v108_v5  ;;  %v178_v14 = vmax.f32 %v171_v8, 0.0 }
 0x108   :  { %v174_v11 = vpop.f32.mrf.mxu0 }
 0x109   :  { %v175_v12 = vadd.f32 %v174_v11, %v112_v4  ;;  %v179_v13 = vmax.f32 %v173_v9, 0.0 }
 0x10b   :  { %v180_v15 = vmax.f32 %v175_v12, 0.0  ;;  %v181_v18 = vpack.c.bf16 %v179_v13, %v177_v16 }
 0x10d   :  { %v182_v17 = vpack.c.bf16 %v180_v15, %v178_v14 }
 0x10f   :  { %419 = vmatprep.mubr.bf16.mxu1 %v182_v17 }
 0x110   :  { %420 = vmatmul.mubr.bf16.vlgmr.msra.gmra.mxu1 %v181_v18 }
 0x1d0   :  { %v421_v26 = vpop.f32.mrf.mxu1 }
 0x1d1   :  { %v422_v33 = vadd.f32 %v421_v26, %v220_v28 }
 0x1d2   :  { %v423_v29 = vpop.f32.mrf.mxu1 }
 0x1d3   :  { %v424_v31 = vadd.f32 %v423_v29, %v224_v27  ;;  %v430_v39 = vmax.f32 %v422_v33, 0.0 }
 0x1d4   :  { %v425_v30 = vpop.f32.mrf.mxu1 }
 0x1d5   :  { %v426_v32 = vadd.f32 %v425_v30, %v220_v28  ;;  %v431_v37 = vmax.f32 %v424_v31, 0.0 }
 0x1d6   :  { %v427_v34 = vpop.f32.mrf.mxu1 }
 0x1d7   :  { %v428_v35 = vadd.f32 %v427_v34, %v224_v27  ;;  %v432_v36 = vmax.f32 %v426_v32, 0.0 }
 0x1d9   :  { %v433_v38 = vmax.f32 %v428_v35, 0.0  ;;  %v434_v41 = vpack.c.bf16 %v432_v36, %v430_v39 }
 0x1db   :  { %v435_v40 = vpack.c.bf16 %v433_v38, %v431_v37 }
 0x1dd   :  { %672 = vmatprep.mubr.bf16.mxu0 %v435_v40 }
 0x1de   :  { %673 = vmatmul.mubr.bf16.vlgmr.msra.gmra.mxu0 %v434_v41 }
 0x29e   :  { %v674_v44 = vpop.f32.mrf.mxu0 }
 0x29f   :  { %v675_v56 = vadd.f32 %v674_v44, %v473_v52 }
 0x2a0   :  { %v676_v45 = vpop.f32.mrf.mxu0 }
 0x2a1   :  { %v677_v46 = vadd.f32 %v676_v45, %v477_v43 }
 0x2a2   :  { %v678_v47 = vpop.f32.mrf.mxu0 }
 0x2a3   :  { %v683_v48 = vmul.f32 1.442695, %v677_v46  ;;  %v679_v60 = vadd.f32 %v678_v47, %v473_v52 }
 0x2a4   :  { %v680_v49 = vpop.f32.mrf.mxu0 }
 0x2a5   :  { %912 = vpow2.f32 %v683_v48  ;;  %v681_v50 = vadd.f32 %v680_v49, %v477_v43 }
 0x2a7   :  { %v685_v51 = vmul.f32 1.442695, %v681_v50 }
 0x2a9   :  { %914 = vpow2.f32 %v685_v51 }
 0x2b2   :  { %v913_v54 = vpop.eup %912 }
 0x2b3   :  { %v689_v55 = vmul.f32 %v913_v54, %v687_v53 }
 0x2b5   :  { %v691_v59 = vadd.f32 %v689_v55, %v675_v56 }
 0x2b6   :  { %v915_v58 = vpop.eup %914 }
 0x2b7   :  { %v690_v61 = vmul.f32 %v915_v58, %v688_v57  ;;  %916 = vtanh.f32 %v691_v59 }
 0x2b9   :  { %v692_v62 = vadd.f32 %v690_v61, %v679_v60 }
 0x2bb   :  { %918 = vtanh.f32 %v692_v62 }
 0x2c4   :  { %v917_v63 = vpop.eup %916 }
 0x2c8   :  { %v919_v0 = vpop.eup %918 }
 0x2c9   :  { %v799_v2 = vpack.c.bf16 %v919_v0, %v917_v63 }
 0x2cb   :  { %800 = vst [vmem:[#allocation11] sm:$0xff] %v799_v2  }
 0x2cc   :  { %1031 = shalt.err (!%p1028_p1)
}
 0x2cd   :  { %716 = dma.vmem_to_hbm [thread:$0]  %s711_s11, 128, %s1162_s8, [#allocation4], %s1053_s19, %s1053_s19, %s1054_s20  }
 0x2ce   :  { %1046 = dma.done.wait [#allocation4], 128  }
 0x2cf   :  { %1047 = vsyncadd [#allocation4], 4294967168 }
 0x2d0   :  { %720 = vsyncpa [#allocation3], 1 }
 0x2d1   :  { %721 = vsyncpa [#allocation6], 1 }
 0x2d2   :  { %722 = vsyncpa [#allocation9], 1 }
 0x2d3   :  { %723 = vsyncpa [#allocation4], 1 }

</bundles_post_ra>
